<compile_context>
chip_gen: v7x
topology: tpu7x:2x2x1
jax: 0.10.0
libtpu: 0.0.40
codegen_flags: <defaults>
</compile_context>

<pallas_src>
import functools

import jax
import jax.numpy as jnp
from jax.experimental import pallas as pl
from jax.experimental.pallas import tpu as pltpu


# ----------------------------------------------------------------------------
# Pallas kernel: decode one (row_tile, L) slab.
#   rows  = (batch, anchor, attribute) flattened ; lanes = spatial (y*nx + x)
#   mode per row: 0 -> x-coord, 1 -> y-coord, 2 -> w/h, 3 -> objectness/class
#   mul  per row: stride (mode 0/1), anchor_w/h (mode 2, x4 if new_coords), 1 (mode 3)
# ----------------------------------------------------------------------------
def _yolo_decode_kernel(x_ref, gxy_ref, mode_ref, mul_ref, o_ref, *,
                        row_tile, new_coords):
    i = pl.program_id(0)
    r0 = pl.multiple_of(i * row_tile, 8)            # aligned sublane start
    mode = mode_ref[pl.ds(r0, row_tile), :]         # (row_tile, 1) int32, resident
    mul = mul_ref[pl.ds(r0, row_tile), :]           # (row_tile, 1) f32,  resident

    v = x_ref[...].astype(jnp.float32)              # (row_tile, L), upcast in-kernel
    gx = gxy_ref[0:1, :]                            # (1, L) x offsets, resident
    gy = gxy_ref[1:2, :]                            # (1, L) y offsets, resident

    is_wh = mode == 2
    if new_coords:
        # xy: (v + grid) * stride ; wh: v^2 * (4*anchor) ; rest: passthrough
        base = jnp.where(is_wh, v * v, v)
    else:
        # One transcendental per element: exp(v) for wh rows, exp(-v) otherwise,
        # sigmoid(v) = 1 / (1 + exp(-v)).
        ev = jnp.exp(jnp.where(is_wh, v, -v))
        base = jnp.where(is_wh, ev, 1.0 / (1.0 + ev))

    add = jnp.where(mode == 0, gx, jnp.where(mode == 1, gy, 0.0))
    o_ref[...] = ((base + add) * mul).astype(o_ref.dtype)


# ----------------------------------------------------------------------------
# Wrapper (matches YOLOLayer.forward semantics)
# ----------------------------------------------------------------------------
def yolo_layer_forward(x, anchors, num_classes, img_size, *, new_coords=False,
                       training=False):
    bs, ch, ny, nx = x.shape
    na = anchors.shape[0]
    no = num_classes + 5
    assert ch == na * no, (ch, na, no)
    # NOTE: like the PyTorch module, stride assumes a square feature map.
    stride = img_size // ny

    if training:
        # Training-mode branch is a pure layout permute; no compute -> no kernel.
        return x.reshape(bs, na, no, ny, nx).transpose(0, 1, 3, 4, 2)

    R = bs * na * no              # rows  : (batch, anchor, attribute)
    L = ny * nx                   # lanes : spatial positions

    # --- tiny per-row control vectors (R elements each) -----------------------
    c = jnp.arange(no)
    mode_c = jnp.where(c == 0, 0,
                       jnp.where(c == 1, 1, jnp.where(c < 4, 2, 3))).astype(jnp.int32)
    mul_ac = jnp.ones((na, no), jnp.float32)
    mul_ac = mul_ac.at[:, 0:2].set(float(stride))
    mul_ac = mul_ac.at[:, 2:4].set(
        anchors.astype(jnp.float32) * (4.0 if new_coords else 1.0))
    mode = jnp.tile(mode_c, bs * na)                                  # (R,)
    mul = jnp.tile(mul_ac.reshape(-1), bs)                            # (R,)

    # --- tiny precomputed grid offsets: (2, L) f32, resident in VMEM ----------
    lin = jnp.arange(L, dtype=jnp.int32)
    gxy = jnp.stack([(lin % nx).astype(jnp.float32),
                     (lin // nx).astype(jnp.float32)], axis=0)        # (2, L)

    # --- tiling: full lane extent, large row tiles -----------------------------
    itemsize = x.dtype.itemsize
    sub = max(8, 32 // max(itemsize, 1))            # 8 for f32, 16 for bf16
    # ~4 MiB f32 output block -> double-buffered in+out ~16 MiB (fits everywhere).
    budget_rows = max(sub, ((4 * 1024 * 1024) // (L * 4)) // sub * sub)
    if budget_rows >= R:
        if R >= 2 * sub:
            # keep >= 2 row tiles so both v7x TensorCores get work
            row_tile = (-(-((R + 1) // 2)) // sub + (1 if ((R + 1) // 2) % sub else 0))
            row_tile = ((((R + 1) // 2) + sub - 1) // sub) * sub
        else:
            row_tile = R                            # full extent, single block
    else:
        row_tile = budget_rows
    grid_rows = pl.cdiv(R, row_tile)
    R_ctrl = grid_rows * row_tile

    # Pad only the tiny control vectors (R elements) -- NOT the activation tensor.
    mode = jnp.pad(mode, (0, R_ctrl - R), constant_values=3).reshape(R_ctrl, 1)
    mul = jnp.pad(mul, (0, R_ctrl - R), constant_values=1.0).reshape(R_ctrl, 1)

    x2 = x.reshape(R, L)                            # pure reshape, native dtype

    kernel = functools.partial(_yolo_decode_kernel, row_tile=row_tile,
                               new_coords=new_coords)
    out = pl.pallas_call(
        kernel,
        out_shape=jax.ShapeDtypeStruct((R, L), jnp.float32),
        grid_spec=pltpu.PrefetchScalarGridSpec(
            num_scalar_prefetch=0,
            grid=(grid_rows,),
            in_specs=[
                pl.BlockSpec((row_tile, L), lambda i: (i, 0)),        # streamed
                pl.BlockSpec((2, L), lambda i: (0, 0)),               # resident
                pl.BlockSpec((R_ctrl, 1), lambda i: (0, 0)),          # resident
                pl.BlockSpec((R_ctrl, 1), lambda i: (0, 0)),          # resident
            ],
            out_specs=pl.BlockSpec((row_tile, L), lambda i: (i, 0)),
        ),
        compiler_params=pltpu.CompilerParams(
            dimension_semantics=("parallel",),
            vmem_limit_bytes=32 * 1024 * 1024),
    )(x2, gxy, mode, mul)

    # TODO(synk): this final permute (bs,na,no,L) -> (bs,na,L,no) is layout plumbing
    # demanded by the module's .permute(0,1,3,4,2).view(bs,-1,no); skip it if the
    # downstream consumer (head concat / NMS) can take the kernel-native (R, L) layout.
    return out.reshape(bs, na, no, L).transpose(0, 1, 3, 2).reshape(bs, na * L, no)


# ----------------------------------------------------------------------------
# Pure-JAX reference (mirrors the PyTorch forward) for correctness checking
# ----------------------------------------------------------------------------
def yolo_layer_reference(x, anchors, num_classes, img_size, *, new_coords=False):
    bs, _, ny, nx = x.shape
    na = anchors.shape[0]
    no = num_classes + 5
    stride = img_size // ny
    xr = x.reshape(bs, na, no, ny, nx).transpose(0, 1, 3, 4, 2).astype(jnp.float32)
    yv, xv = jnp.meshgrid(jnp.arange(ny), jnp.arange(nx), indexing="ij")
    grid = jnp.stack((xv, yv), 2).reshape(1, 1, ny, nx, 2).astype(jnp.float32)
    ag = anchors.astype(jnp.float32).reshape(1, na, 1, 1, 2)
    if new_coords:
        xy = (xr[..., 0:2] + grid) * stride
        wh = xr[..., 2:4] ** 2 * (4.0 * ag)
        rest = xr[..., 4:]
    else:
        xy = (jax.nn.sigmoid(xr[..., 0:2]) + grid) * stride
        wh = jnp.exp(xr[..., 2:4]) * ag
        rest = jax.nn.sigmoid(xr[..., 4:])
    return jnp.concatenate([xy, wh, rest], axis=-1).reshape(bs, -1, no)


if __name__ == "__main__":
    key = jax.random.PRNGKey(0)
    anchors = jnp.array([[10.0, 14.0], [23.0, 27.0], [37.0, 58.0]], jnp.float32)
    num_classes = 1
    na, no = anchors.shape[0], num_classes + 5
    bs, ny, nx = 2, 16, 16
    img_size = 64                                    # stride = 4

    x = jax.random.normal(key, (bs, na * no, ny, nx), jnp.float32)

    for nc_flag in (False, True):                    # classic and YOLOv7-new-coords paths
        out = yolo_layer_forward(x, anchors, num_classes, img_size, new_coords=nc_flag)
        out = jax.block_until_ready(out)
        ref = yolo_layer_reference(x, anchors, num_classes, img_size, new_coords=nc_flag)
        assert out.shape == (bs, na * ny * nx, no), out.shape
        assert bool(jnp.all(jnp.isfinite(out)))
        assert bool(jnp.allclose(out, ref, rtol=5e-5, atol=5e-3)), \
            float(jnp.max(jnp.abs(out - ref)))

    # TODO(synk): loss-related members (mse_loss / bce_loss) are unused in forward and
    # therefore not implemented.
    print("KERNEL_OK")
</pallas_src>

<mosaic_0001>
module attributes {stable_mosaic.version = 11 : i64} {
  func.func @_yolo_decode_kernel(%arg0: i32, %arg1: memref<24x256xf32, #tpu.memory_space<vmem>>, %arg2: memref<2x256xf32, #tpu.memory_space<vmem>>, %arg3: memref<48x1xi32, #tpu.memory_space<vmem>>, %arg4: memref<48x1xf32, #tpu.memory_space<vmem>>, %arg5: memref<24x256xf32, #tpu.memory_space<vmem>>) attributes {dimension_semantics = [#tpu.dimension_semantics<parallel>], iteration_bounds = array<i64: 2>, scalar_prefetch = 0 : i64, scratch_operands = 0 : i64, tpu.core_type = #tpu.core_type<tc>, window_params = [{transform_indices = @transform_0, window_bounds = array<i64: 24, 256>}, {pipeline_mode = #tpu.pipeline_mode<synchronous>, transform_indices = @transform_1, window_bounds = array<i64: 2, 256>}, {pipeline_mode = #tpu.pipeline_mode<synchronous>, transform_indices = @transform_2, window_bounds = array<i64: 48, 1>}, {pipeline_mode = #tpu.pipeline_mode<synchronous>, transform_indices = @transform_3, window_bounds = array<i64: 48, 1>}, {transform_indices = @transform_4, window_bounds = array<i64: 24, 256>}]} {
    %c24_i32 = arith.constant 24 : i32
    %0 = arith.muli %arg0, %c24_i32 : i32
    %1 = tpu.assume_multiple %0, 8 : i32
    %2 = arith.index_cast %1 : i32 to index
    %c0 = arith.constant 0 : index
    %3 = vector.load %arg3[%2, %c0] : memref<48x1xi32, #tpu.memory_space<vmem>>, vector<24x1xi32>
    %4 = arith.index_cast %1 : i32 to index
    %c0_0 = arith.constant 0 : index
    %5 = vector.load %arg4[%4, %c0_0] : memref<48x1xf32, #tpu.memory_space<vmem>>, vector<24x1xf32>
    %c0_1 = arith.constant 0 : index
    %c0_2 = arith.constant 0 : index
    %6 = vector.load %arg1[%c0_1, %c0_2] : memref<24x256xf32, #tpu.memory_space<vmem>>, vector<24x256xf32>
    %c0_3 = arith.constant 0 : index
    %c0_4 = arith.constant 0 : index
    %7 = vector.load %arg2[%c0_3, %c0_4] : memref<2x256xf32, #tpu.memory_space<vmem>>, vector<1x256xf32>
    %c1 = arith.constant 1 : index
    %c0_5 = arith.constant 0 : index
    %8 = vector.load %arg2[%c1, %c0_5] : memref<2x256xf32, #tpu.memory_space<vmem>>, vector<1x256xf32>
    %c2_i32 = arith.constant 2 : i32
    %9 = vector.broadcast %c2_i32 : i32 to vector<24x1xi32>
    %10 = arith.cmpi eq, %3, %9 : vector<24x1xi32>
    %cst = arith.constant 0.000000e+00 : f32
    %11 = vector.broadcast %cst : f32 to vector<24x256xf32>
    %12 = arith.subf %11, %6 : vector<24x256xf32>
    %13 = vector.shape_cast %10 : vector<24x1xi1> to vector<24x1xi1>
    %14 = vector.broadcast %13 : vector<24x1xi1> to vector<24x256xi1>
    %15 = arith.select %14, %6, %12 : vector<24x256xi1>, vector<24x256xf32>
    %16 = math.exp %15 : vector<24x256xf32>
    %cst_6 = arith.constant 1.000000e+00 : f32
    %17 = vector.broadcast %cst_6 : f32 to vector<24x256xf32>
    %18 = arith.addf %17, %16 : vector<24x256xf32>
    %cst_7 = arith.constant 1.000000e+00 : f32
    %19 = vector.broadcast %cst_7 : f32 to vector<24x256xf32>
    %20 = arith.divf %19, %18 : vector<24x256xf32>
    %21 = vector.shape_cast %10 : vector<24x1xi1> to vector<24x1xi1>
    %22 = vector.broadcast %21 : vector<24x1xi1> to vector<24x256xi1>
    %23 = arith.select %22, %16, %20 : vector<24x256xi1>, vector<24x256xf32>
    %c0_i32 = arith.constant 0 : i32
    %24 = vector.broadcast %c0_i32 : i32 to vector<24x1xi32>
    %25 = arith.cmpi eq, %3, %24 : vector<24x1xi32>
    %c1_i32 = arith.constant 1 : i32
    %26 = vector.broadcast %c1_i32 : i32 to vector<24x1xi32>
    %27 = arith.cmpi eq, %3, %26 : vector<24x1xi32>
    %cst_8 = arith.constant 0.000000e+00 : f32
    %28 = vector.shape_cast %27 : vector<24x1xi1> to vector<24x1xi1>
    %29 = vector.broadcast %28 : vector<24x1xi1> to vector<24x256xi1>
    %30 = vector.shape_cast %8 : vector<1x256xf32> to vector<1x256xf32>
    %31 = vector.broadcast %30 : vector<1x256xf32> to vector<24x256xf32>
    %32 = vector.broadcast %cst_8 : f32 to vector<24x256xf32>
    %33 = arith.select %29, %31, %32 : vector<24x256xi1>, vector<24x256xf32>
    %34 = vector.shape_cast %25 : vector<24x1xi1> to vector<24x1xi1>
    %35 = vector.broadcast %34 : vector<24x1xi1> to vector<24x256xi1>
    %36 = vector.shape_cast %7 : vector<1x256xf32> to vector<1x256xf32>
    %37 = vector.broadcast %36 : vector<1x256xf32> to vector<24x256xf32>
    %38 = arith.select %35, %37, %33 : vector<24x256xi1>, vector<24x256xf32>
    %39 = arith.addf %23, %38 : vector<24x256xf32>
    %40 = vector.broadcast %5 : vector<24x1xf32> to vector<24x256xf32>
    %41 = arith.mulf %39, %40 : vector<24x256xf32>
    %c0_9 = arith.constant 0 : index
    %c0_10 = arith.constant 0 : index
    %42 = vector.load %arg5[%c0_9, %c0_10] : memref<24x256xf32, #tpu.memory_space<vmem>>, vector<24x256xf32>
    tpu.vector_store %arg5[%c0_9, %c0_10], %41 {strides = array<i32>} : memref<24x256xf32, #tpu.memory_space<vmem>>, vector<24x256xf32>,
    return
  }
  func.func @transform_0(%arg0: i32) -> (i32, i32) {
    %c0_i32 = arith.constant 0 : i32
    %c0_i32_0 = arith.constant 0 : i32
    return %arg0, %c0_i32 : i32, i32
  }
  func.func @transform_1(%arg0: i32) -> (i32, i32) {
    %c0_i32 = arith.constant 0 : i32
    %c0_i32_0 = arith.constant 0 : i32
    %c0_i32_1 = arith.constant 0 : i32
    return %c0_i32, %c0_i32_0 : i32, i32
  }
  func.func @transform_2(%arg0: i32) -> (i32, i32) {
    %c0_i32 = arith.constant 0 : i32
    %c0_i32_0 = arith.constant 0 : i32
    %c0_i32_1 = arith.constant 0 : i32
    return %c0_i32, %c0_i32_0 : i32, i32
  }
  func.func @transform_3(%arg0: i32) -> (i32, i32) {
    %c0_i32 = arith.constant 0 : i32
    %c0_i32_0 = arith.constant 0 : i32
    %c0_i32_1 = arith.constant 0 : i32
    return %c0_i32, %c0_i32_0 : i32, i32
  }
  func.func @transform_4(%arg0: i32) -> (i32, i32) {
    %c0_i32 = arith.constant 0 : i32
    %c0_i32_0 = arith.constant 0 : i32
    return %arg0, %c0_i32 : i32, i32
  }
}

</mosaic_0001>

<bundles_post_ra>
// kernel: tpu_custom_call.1
= control target key start
LH: loop header
LB: loop body
LE: loop exit
PB: predicated region body
PF: predicated region fallthrough
CT: control target
= control target key end

     0   :  { %9 = vsyncpa [#allocation3], 0  ;;  %s871_s0 = inlined_call_operand.vmem [shape: f32[36,256], index: 0, kind: input, shape index: {}]   ;;  %s872_s1 = inlined_call_operand.vmem [shape: f32[2,256], index: 1, kind: input, shape index: {}]   ;;  %s873_s2 = inlined_call_operand.vmem [shape: s32[48,1], index: 2, kind: input, shape index: {}]   ;;  %s874_s3 = inlined_call_operand.vmem [shape: f32[48,1], index: 3, kind: input, shape index: {}]   ;;  %s875_s4 = inlined_call_operand.hbm [shape: f32[36,256], index: 4, kind: output, shape index: {}]  }
   0x1   :  { %11 = vsyncpa [#allocation3 + $0x1], 0  ;;  %s689_s15 = smov 0   ;;  %s691_s16 = smov 0  }
   0x2   :  { %s693_s17 = smov 0   ;;  %s695_s18 = smov 0  }
   0x3 LB: > { %s710_s19 = sadd.s32 4294967295, %s658_s18   ;;  %s507_s20 = sadd.s32 4294967294, %s658_s18   ;;  %s658_s18 = sphi %s695_s18, %s881_s18   ;;  %s654_s17 = sphi %s693_s17, %s880_s17   ;;  %s650_s16 = sphi %s691_s16, %s879_s16   ;;  %s646_s15 = sphi %s689_s15, %s878_s15  }
   0x4   : > { %s714_s21 = sadd.s32 1, %s658_s18   ;;  %s113_s22 = sadd.s32 1, %s654_s17 }
   0x5   : > { %s110_s23 = ssub.s32 %s658_s18, %s714_s21  ;;  %p123_p0 = scmp.ne.s32.totalorder %s654_s17, %s650_s16 }
   0x6   : > { %p111_p1 = scmp.eq.s32.totalorder %s110_s23, 0  ;;  %p124_p2 = scmp.eq.s32.totalorder %s710_s19, 1 }
   0x7   : > { %p129_p3 = scmp.ne.s32.totalorder %s650_s16, %s646_s15  ;;  %p130_p4 = scmp.eq.s32.totalorder %s507_s20, 1 }
   0x8   : > { %s725_s24 = scalar_select %p111_p1, %s654_s17, %s113_s22  }
   0x9   : > { %p727_p5 = por %p124_p2, %p123_p0  ;;  %p731_p6 = por %p130_p4, %p129_p3 }
   0xa   : > { %p510_p7 = scmp.ge.s32.totalorder %s658_s18, 1  ;;  %p177_p8 = scmp.lt.s32.totalorder %s658_s18, 3 }
   0xc   : > { %p178_p9 = pnand %p510_p7, %p177_p8 }
   0xd   : > { %s232_s27 = smul.u32 (!%p178_p9), 24, %s710_s19  ;;  %v660_v0 = vmov (!%p178_p9), 0   ;;  %s206_s8 = sand.u32 (!%p178_p9), 1, %s650_s16   ;;  %v338_v45 = vlaneseq (!%p178_p9)  ;;  %v513_v63 = vld [vmem:[%s872_s1 + $0x1] ss:$2 sm:$0x3] (!%p178_p9) }
   0xe   : > { %181 = sbr.rel (%p178_p9) target bundleno = 214 (0xd6), region = 36  ;;  %571 = vset.pattern.permute.xlu1 (!%p178_p9), %v660_v0  ;;  %570 = vset.pattern.permute.xlu0 (!%p178_p9), %v660_v0 }
   0xf   : > { %s233_s30 = scalar_lea.vmem (!%p178_p9), %s873_s2, %s232_s27  ;;  %s237_s7 = scalar_lea.vmem (!%p178_p9), %s874_s3, %s232_s27  ;;  %v339_v50 = vshrl.u32 (!%p178_p9), %v338_v45, 7 }
  0x10   : > { %v236_v1 = vld [vmem:[%s233_s30 + $0x10] sm:$0xff] (!%p178_p9)  ;;  %v234_v2 = vld [vmem:[%s233_s30] sm:$0xff] (!%p178_p9)  ;;  %v235_v3 = vld [vmem:[%s233_s30 + $0x8] sm:$0xff] (!%p178_p9)  ;;  %s750_s9 = smul.u32 (!%p178_p9), 3, %s710_s19  ;;  %s811_s30 = scalar_lea.sflag (!%p178_p9), [#allocation3], %s206_s8 }
  0x11   : > { %vm252_vm0 = vcmp.eq.s32.totalorder (!%p178_p9), %v236_v1, 2  ;;  %vm250_vm1 = vcmp.eq.s32.totalorder (!%p178_p9), %v234_v2, 2  ;;  %vm319_vm2 = vcmp.eq.s32.totalorder (!%p178_p9), %v234_v2, 1  ;;  %vm251_vm3 = vcmp.eq.s32.totalorder (!%p178_p9), %v235_v3, 2  ;;  %v238_v12 = vld [vmem:[%s237_s7] sm:$0xff] (!%p178_p9)  ;;  %v240_v14 = vld [vmem:[%s237_s7 + $0x10] sm:$0xff] (!%p178_p9) }
  0x12   : > { %v261_v4 = vsel (!%p178_p9), %vm252_vm0, 1, %v660_v0  ;;  %v259_v5 = vsel (!%p178_p9), %vm250_vm1, 1, %v660_v0  ;;  %v322_v6 = vsel (!%p178_p9), %vm319_vm2, 1, %v660_v0  ;;  %v260_v7 = vsel (!%p178_p9), %vm251_vm3, 1, %v660_v0  ;;  %v239_v15 = vld [vmem:[%s237_s7 + $0x8] sm:$0xff] (!%p178_p9)  ;;  %p215_p10 = scmp.lt.s32.totalorder (!%p178_p9), %s750_s9, 4 }
  0x13   : > { %269 = vperm.xlu1 (!%p178_p9), %571, %v261_v4   ;;  %263 = vperm.xlu0 (!%p178_p9), %570, %v259_v5   ;;  %vm321_vm4 = vcmp.eq.s32.totalorder (!%p178_p9), %v236_v1, 1  ;;  %vm320_vm5 = vcmp.eq.s32.totalorder (!%p178_p9), %v235_v3, 1  ;;  %vm317_vm6 = vcmp.eq.s32.totalorder (!%p178_p9), %v235_v3, 0  ;;  %vm316_vm7 = vcmp.eq.s32.totalorder (!%p178_p9), %v234_v2, 0  ;;  %s786_s28 = smul.u32 (!%p178_p9), 48, %s206_s8 }
  0x14   : > { %v324_v8 = vsel (!%p178_p9), %vm321_vm4, 1, %v660_v0  ;;  %v323_v9 = vsel (!%p178_p9), %vm320_vm5, 1, %v660_v0  ;;  %v355_v10 = vsel (!%p178_p9), %vm317_vm6, 1, %v660_v0  ;;  %v354_v11 = vsel (!%p178_p9), %vm316_vm7, 1, %v660_v0 }
  0x15   : > { %vm318_vm8 = vcmp.eq.s32.totalorder %v236_v1, 0  ;;  %s216_s10 = scalar_select %p215_p10, %s750_s9, 4  ;;  %v340_v60 = vsub.s32 0, %v339_v50  ;;  %v344_v61 = vsub.s32 1, %v339_v50 }
  0x16   : > { %v356_v13 = vsel %vm318_vm8, 1, %v660_v0  ;;  %v247_v4 = vld [vmem:[%s872_s1] ss:$2 sm:$0x3]  ;;  %s208_s29 = scalar_lea.vmem [#allocation2], %s786_s28  ;;  %s428_s5 = ssub.s32 (%p727_p5), 5, %s750_s9 }
  0x17   : > { %326 = vperm.xlu1 %571, %v322_v6   ;;  %266 = vperm.xlu0 %570, %v260_v7   ;;  %s523_s11 = sshll.u32 %s216_s10, 4  ;;  %v341_v2 = vrot.slane %v513_v63, %v340_v60  ;;  %v345_v3 = vrot.slane %v513_v63, %v344_v61  ;;  %v373_v6 = vrot.slane %v247_v4, %v340_v60  ;;  %p429_p11 = scmp.lt.s32.totalorder (%p727_p5), %s428_s5, 3 }
  0x18   : > { %s219_s14 = scalar_lea.vmem %s871_s0, %s523_s11  ;;  %v377_v7 = vrot.slane %v247_v4, %v344_v61 }
  0x19   : > { %v245_v16 = vld [vmem:[%s219_s14 + $0x20] sm:$0xff]  ;;  %v246_v17 = vld [vmem:[%s219_s14 + $0x28] sm:$0xff]  ;;  %v243_v24 = vld [vmem:[%s219_s14 + $0x10] sm:$0xff] }
  0x1a   : > { %v241_v18 = vld [vmem:[%s219_s14] sm:$0xff]  ;;  %v242_v19 = vld [vmem:[%s219_s14 + $0x8] sm:$0xff]  ;;  %v257_v20 = vsub.f32 0.0, %v245_v16  ;;  %v258_v21 = vsub.f32 0.0, %v246_v17  ;;  %v244_v25 = vld [vmem:[%s219_s14 + $0x18] sm:$0xff]  ;;  %v255_v28 = vsub.f32 0.0, %v243_v24 }
  0x1b   : > { %332 = vperm.xlu1 %571, %v324_v8   ;;  %329 = vperm.xlu0 %570, %v323_v9   ;;  %v253_v22 = vsub.f32 0.0, %v241_v18  ;;  %v254_v23 = vsub.f32 0.0, %v242_v19  ;;  %v256_v29 = vsub.f32 0.0, %v244_v25 }
  0x1f   : > { %361 = vperm.xlu1 %571, %v355_v10   ;;  %358 = vperm.xlu0 %570, %v354_v11  }
  0x23   : > { %394 = vperm.xlu1 %571, %v238_v12   ;;  %364 = vperm.xlu0 %570, %v356_v13  }
  0x27   : > { %404 = vperm.xlu1 %571, %v240_v14   ;;  %399 = vperm.xlu0 %570, %v239_v15  }
  0x92   : > { %v757_v26 = vpop.permute.xlu1 %269  ;;  %v759_v27 = vpop.permute.xlu0 %263 }
  0x93   : > { %vm273_vm9 = vcmp.eq.s32.totalorder %v757_v26, 1  ;;  %vm271_vm10 = vcmp.eq.s32.totalorder %v759_v27, 1 }
  0x94   : > { %v278_v30 = vsel %vm273_vm9, %v245_v16, %v257_v20  ;;  %v279_v31 = vsel %vm273_vm9, %v246_v17, %v258_v21  ;;  %v274_v32 = vsel %vm271_vm10, %v241_v18, %v253_v22  ;;  %v275_v33 = vsel %vm271_vm10, %v242_v19, %v254_v23 }
  0x95   : > { %v288_v34 = vmul.f32 1.442695, %v278_v30  ;;  %v290_v35 = vmul.f32 1.442695, %v279_v31  ;;  %v280_v36 = vmul.f32 1.442695, %v274_v32 }
  0x96   : > { %v282_v37 = vmul.f32 1.442695, %v275_v33  ;;  %v771_v38 = vpop.permute.xlu0 %266  ;;  %v327_v40 = vpop.permute.xlu1 %326 }
  0x97   : > { %572 = vpow2.f32 %v288_v34  ;;  %vm272_vm11 = vcmp.eq.s32.totalorder %v771_v38, 1  ;;  %vm334_vm12 = vcmp.eq.s32.totalorder %v327_v40, 1 }
  0x98   : > { %574 = vpow2.f32 %v290_v35  ;;  %v276_v39 = vsel %vm272_vm11, %v243_v24, %v255_v28  ;;  %v277_v41 = vsel %vm272_vm11, %v244_v25, %v256_v29  ;;  %v348_v9 = vsel %vm334_vm12, %v341_v2, 0.0 }
  0x99   : > { %576 = vpow2.f32 %v280_v36  ;;  %v284_v42 = vmul.f32 1.442695, %v276_v39  ;;  %v286_v43 = vmul.f32 1.442695, %v277_v41  ;;  %v349_v10 = vsel %vm334_vm12, %v345_v3, 0.0 }
  0x9a   : > { %578 = vpow2.f32 %v282_v37  ;;  %v330_v44 = vpop.permute.xlu0 %329  ;;  %v333_v46 = vpop.permute.xlu1 %332 }
  0x9b   : > { %580 = vpow2.f32 %v284_v42  ;;  %vm336_vm13 = vcmp.eq.s32.totalorder %v333_v46, 1  ;;  %vm335_vm14 = vcmp.eq.s32.totalorder %v330_v44, 1 }
  0x9c   : > { %582 = vpow2.f32 %v286_v43  ;;  %v352_v11 = vsel %vm336_vm13, %v341_v2, 0.0  ;;  %v353_v13 = vsel %vm336_vm13, %v345_v3, 0.0  ;;  %v350_v14 = vsel %vm335_vm14, %v341_v2, 0.0 }
  0x9d   : > { %v351_v23 = vsel %vm335_vm14, %v345_v3, 0.0 }
  0x9e   : > { %v359_v53 = vpop.permute.xlu0 %358  ;;  %v362_v58 = vpop.permute.xlu1 %361 }
  0x9f   : > { %vm366_vm0 = vcmp.eq.s32.totalorder %v359_v53, 1  ;;  %vm367_vm1 = vcmp.eq.s32.totalorder %v362_v58, 1 }
  0xa0   : > { %v380_v24 = vsel %vm366_vm0, %v373_v6, %v348_v9  ;;  %v381_v31 = vsel %vm366_vm0, %v377_v7, %v349_v10  ;;  %v382_v34 = vsel %vm367_vm1, %v373_v6, %v350_v14  ;;  %v383_v39 = vsel %vm367_vm1, %v377_v7, %v351_v23 }
  0xa1   : > { %v573_v47 = vpop.eup %572 }
  0xa2   : > { %v575_v48 = vpop.eup %574  ;;  %v296_v49 = vadd.f32 1.0, %v573_v47  ;;  %v365_v1 = vpop.permute.xlu0 %364 }
  0xa3   : > { %v577_v51 = vpop.eup %576  ;;  %v297_v52 = vadd.f32 1.0, %v575_v48  ;;  %v395_v5 = vpop.permute.xlu1 %394  ;;  %vm368_vm15 = vcmp.eq.s32.totalorder %v365_v1, 1 }
  0xa4   : > { %v579_v54 = vpop.eup %578  ;;  %584 = vrcp.f32 %v296_v49  ;;  %v292_v55 = vadd.f32 1.0, %v577_v51  ;;  %v384_v15 = vsel %vm368_vm15, %v373_v6, %v352_v11  ;;  %v385_v18 = vsel %vm368_vm15, %v377_v7, %v353_v13 }
  0xa5   : > { %v581_v56 = vpop.eup %580  ;;  %586 = vrcp.f32 %v297_v52  ;;  %v293_v57 = vadd.f32 1.0, %v579_v54 }
  0xa6   : > { %v583_v59 = vpop.eup %582  ;;  %588 = vrcp.f32 %v292_v55  ;;  %v294_v62 = vadd.f32 1.0, %v581_v56  ;;  %v400_v43 = vpop.permute.xlu0 %399 }
  0xa7   : > { %590 = vrcp.f32 %v293_v57  ;;  %v295_v0 = vadd.f32 1.0, %v583_v59  ;;  %v405_v25 = vpop.permute.xlu1 %404 }
  0xa8   : > { %592 = vrcp.f32 %v294_v62 }
  0xa9   : > { %594 = vrcp.f32 %v295_v0 }
  0xae   : > { %v585_v8 = vpop.eup %584 }
  0xaf   : > { %v587_v12 = vpop.eup %586  ;;  %v314_v16 = vsel %vm273_vm9, %v573_v47, %v585_v8 }
  0xb0   : > { %v589_v17 = vpop.eup %588  ;;  %v315_v19 = vsel %vm273_vm9, %v575_v48, %v587_v12  ;;  %v390_v20 = vadd.f32 %v384_v15, %v314_v16 }
  0xb1   : > { %v591_v21 = vpop.eup %590  ;;  %v310_v22 = vsel %vm271_vm10, %v577_v51, %v589_v17  ;;  %v391_v28 = vadd.f32 %v385_v18, %v315_v19 }
  0xb2   : > { %v593_v29 = vpop.eup %592  ;;  %v311_v30 = vsel %vm271_vm10, %v579_v54, %v591_v21  ;;  %v386_v26 = vadd.f32 %v380_v24, %v310_v22  ;;  %v411_v32 = vmul.f32 %v405_v25, %v390_v20 }
  0xb3   : > { %v595_v33 = vpop.eup %594  ;;  %v387_v35 = vadd.f32 %v381_v31, %v311_v30  ;;  %v412_v36 = vmul.f32 %v405_v25, %v391_v28  ;;  %v312_v37 = vsel %vm272_vm11, %v581_v56, %v593_v29  ;;  %426 = sbr.rel (!%p727_p5) target bundleno = 214 (0xd6), region = 40 }
  0xb4   : > { %v407_v40 = vmul.f32 %v395_v5, %v386_v26  ;;  %417 = vst [vmem:[%s208_s29 + $0x20] sm:$0xff] %v411_v32  ;;  %v313_v27 = vsel %vm272_vm11, %v583_v59, %v595_v33  ;;  %v388_v41 = vadd.f32 %v382_v34, %v312_v37 }
  0xb5   : > { %v408_v42 = vmul.f32 %v395_v5, %v387_v35  ;;  %418 = vst [vmem:[%s208_s29 + $0x28] sm:$0xff] %v412_v36  ;;  %v389_v44 = vadd.f32 %v383_v39, %v313_v27 }
  0xb6   : > { %413 = vst [vmem:[%s208_s29] sm:$0xff] %v407_v40  ;;  %v409_v45 = vmul.f32 %v400_v43, %v388_v41 }
  0xb7   : > { %414 = vst [vmem:[%s208_s29 + $0x8] sm:$0xff] %v408_v42  ;;  %v410_v46 = vmul.f32 %v400_v43, %v389_v44 }
  0xb8   : > { %415 = vst [vmem:[%s208_s29 + $0x10] sm:$0xff] %v409_v45 }
  0xb9   : > { %416 = vst [vmem:[%s208_s29 + $0x18] sm:$0xff] %v410_v46 }
  0xba   : > { %s883_s5 = smov (!%p429_p11, %s428_s5), 3 }
  0xbb   : > { %s816_s6 = sshll.u32 %s883_s5, 8 }
  0xbc   : > { %s434_s7 = ssub.s32 768, %s816_s6 }
  0xbd   : > { %435 = vsyncadd %s811_s30, %s434_s7  ;;  %p516_p12 = scmp.ne.s32.totalorder %s816_s6, 0  ;;  %s527_s8 = smul.u32 768, %s710_s19 }
  0xbe   : > { %s441_s10 = sshll.u32 %s208_s29, 4  ;;  %s661_s13 = smov [#allocation2]   ;;  %s827_s10 = int_to_ptr.vmem [resolvable:$true] %s441_s10 }
  0xbf   : > { %s825_s12 = scalar_lea.hbm %s875_s4, %s527_s8  ;;  %s596_s9 = scalar_lea.vmem %s827_s10, %s816_s6 }
  0xc0   : > { %p597_p13 = scmp.ne.s32.totalorder %s827_s10, %s596_s9  ;;  %s600_s14 = sshll.u32 %s661_s13, 4  ;;  %s601_s14 = int_to_ptr.vmem [resolvable:$false] %s600_s14 }
  0xc1   : > { %s602_s19 = scalar_lea.vmem %s601_s14, 1536  ;;  %p603_p2 = scmp.lt.s32.totalorder %s827_s10, %s601_s14 }
  0xc2   : > { %p598_p0 = pnand %p597_p13, %p516_p12  ;;  %p604_p3 = scmp.lt.s32.totalorder %s602_s19, %s596_s9 }
  0xc4   : > { %p599_p1 = pneg %p598_p0  ;;  %p605_p4 = por %p604_p3, %p603_p2 }
  0xc6   : > { %p606_p5 = pnand %p605_p4, %p599_p1 }
  0xc8   : > { %609 = shalt.err (!%p606_p5)
}
  0xc9   : > { %s610_s20 = scalar_lea.hbm %s825_s12, %s816_s6  ;;  %s614_s27 = scalar_lea.hbm %s875_s4, 1280 }
  0xca   : > { %p611_p7 = scmp.ne.s32.totalorder %s825_s12, %s610_s20  ;;  %p615_p10 = scmp.lt.u32.totalorder %s825_s12, %s875_s4 }
  0xcb   : > { %p616_p11 = scmp.lt.u32.totalorder %s614_s27, %s610_s20  ;;  %p618_p0 = scmp.lt.u32.totalorder %s610_s20, %s825_s12 }
  0xcc   : > { %p612_p8 = pnand %p611_p7, %p516_p12 }
  0xcd   : > { %p617_p13 = por %p616_p11, %p615_p10 }
  0xce   : > { %p613_p9 = pneg %p612_p8 }
  0xcf   : > { %p619_p1 = por %p618_p0, %p617_p13 }
  0xd1   : > { %p620_p2 = pnand %p619_p1, %p613_p9 }
  0xd3   : > { %623 = shalt.err (!%p620_p2)
}
  0xd4   : > { %s662_s5 = smov 256   ;;  %s663_s7 = smov 16  }
  0xd5   : > { %447 = dma.vmem_to_hbm [thread:$0]  (%p516_p12), %s827_s10, %s816_s6, %s825_s12, %s811_s30, %s662_s5, %s662_s5, %s663_s7  }
  0xd6 PF: > { %p534_p3 = scmp.ge.s32.totalorder %s658_s18, 2  ;;  %s456_s8 = sand.u32 1, %s646_s15  }
  0xd7   : > { %s457_s11 = scalar_lea.sflag [#allocation3], %s456_s8 }
  0xd8   : > { %p531_p4 = pnand %p534_p3, %p731_p6 }
  0xda   : > { %641 = dma.done.wait (!%p531_p4), %s457_s11, 768  }
  0xdb   : > { %643 = vsyncadd (!%p531_p4), %s457_s11, 4294966528  ;;  %p14_p5 = scmp.ge.s32.totalorder %s714_s21, 4   ;;  %s878_s15 = smov %s650_s16 }
  0xdc   : > { %s879_s16 = smov %s654_s17  ;;  %s880_s17 = smov %s725_s24 }
  0xdd   : > { %s881_s18 = smov %s714_s21  ;;  %16 = sbr.rel (!%p14_p5) target bundleno = 3 (0x3), region = 74 }
  0xe4   :  { %462 = vsyncpa [#allocation3], 1 }
  0xe5   :  { %464 = vsyncpa [#allocation3 + $0x1], 1 }

</bundles_post_ra>
